<compile_context>
chip_gen: v6e
topology: v6e:2x2x1
jax: 0.10.0
libtpu: 0.0.40
codegen_flags: <defaults>
</compile_context>

<pallas_src>
import jax
import jax.numpy as jnp
from jax.experimental import pallas as pl
from jax.experimental.pallas import tpu as pltpu


def _round_up(x, m):
    return ((x + m - 1) // m) * m


def _pad2(a, rows, cols):
    out = jnp.zeros((rows, cols), a.dtype)
    return out.at[: a.shape[0], : a.shape[1]].set(a)


def _vmem_capacity_bytes():
    """Physical per-TensorCore VMEM (64 MiB on v7x, 128 MiB on v5e/v6e)."""
    try:
        return int(pltpu.get_tpu_info().vmem_capacity_bytes)
    except Exception:
        return 64 * 1024 * 1024          # conservative fallback (v7x size)


def _buffered_spec(block_shape, index_map, nbuf):
    """Streaming BlockSpec with extra pipeline depth when supported."""
    try:
        return pl.BlockSpec(block_shape, index_map, pipeline_mode=pl.Buffered(nbuf))
    except Exception:
        return pl.BlockSpec(block_shape, index_map)


def _pick_tm(n, vmem_cap):
    if n <= 256:
        return 128
    if n > 2048 and vmem_cap >= 96 * 1024 * 1024:
        return 512                       # v5e/v6e: 128 MiB VMEM -> wider row tiles
    return 256


def _resident_fits(n_pad, c_pad, g_pad, co_pad, vmem_limit):
    need = (n_pad * n_pad * 2            # resident A_hat (bf16)
            + 2 * n_pad * c_pad * 2      # ping-pong H (bf16)
            + n_pad * c_pad * 2          # HW scratch (bf16)
            + n_pad * c_pad * 4          # f32 HW intermediate
            + 2 * g_pad * n_pad * 2      # P block (double buffered)
            + 4 * c_pad * c_pad * 2      # W_l + W_out blocks (double buffered)
            + (2 << 20))                 # misc headroom
    return need <= int(0.8 * vmem_limit)


# ------------------------- fused forward (one kernel) ----------------------- #

def _make_fused_kernel(tm, resident_a):
    def kernel(a_ref, x_hbm, w_ref, b_ref, p_ref, wo_ref, bo_ref,
               out_ref, *scratch):
        if resident_a:
            a_vmem, h_ref, hw_ref, sems = scratch
        else:
            a_vmem = None
            h_ref, hw_ref, sems = scratch

        layer = pl.program_id(0)
        tile = pl.program_id(1)
        n_layers = pl.num_programs(0)
        n_tiles = pl.num_programs(1)

        # -------- one-time bootstrap: stage X (and A, if resident) in VMEM --- #
        @pl.when(jnp.logical_and(layer == 0, tile == 0))
        def _():
            cp_x = pltpu.make_async_copy(x_hbm, h_ref.at[0], sems.at[0])
            cp_x.start()
            if resident_a:
                cp_a = pltpu.make_async_copy(a_ref, a_vmem, sems.at[1])
                cp_a.start()
                cp_a.wait()
            cp_x.wait()

        slot_in = layer % 2
        slot_out = (layer + 1) % 2
        row0 = pl.multiple_of(tile * tm, tm)

        # -------- per layer: HW = H @ W_l once, reused by every row tile ----- #
        @pl.when(tile == 0)
        def _():
            hw = jnp.dot(h_ref[slot_in], w_ref[0],
                         preferred_element_type=jnp.float32)
            hw_ref[...] = hw.astype(jnp.bfloat16)

        # -------- per row tile: H_new[rows] = relu(A[rows, :] @ HW + b) ------ #
        if resident_a:
            a_rows = a_vmem[pl.ds(row0, tm), :]            # VMEM-resident A
        else:
            a_rows = a_ref[...]                            # streamed A rows
        acc = jnp.dot(a_rows, hw_ref[...], preferred_element_type=jnp.float32)
        h_new = jnp.maximum(acc + b_ref[0], 0.0).astype(jnp.bfloat16)
        h_ref[slot_out, pl.ds(row0, tm), :] = h_new        # dropout p=0 == id

        # -------- fused head: global_mean_pool + Linear on the last step ----- #
        @pl.when(jnp.logical_and(layer == n_layers - 1, tile == n_tiles - 1))
        def _():
            # H of the final layer is fully resident in VMEM at this point.
            pooled = jnp.dot(p_ref[...], h_ref[slot_out],
                             preferred_element_type=jnp.float32)   # f32 accum
            out_ref[...] = (jnp.dot(pooled.astype(jnp.bfloat16), wo_ref[...],
                                    preferred_element_type=jnp.float32)
                            + bo_ref[...])

    return kernel


def _fused_forward(a_p, x_p, w_stack, b_stack, p_p, w_outT, b_out,
                   *, tm, resident_a, vmem_limit):
    n_pad, c_pad = x_p.shape
    num_layers = w_stack.shape[0]
    g_pad = p_p.shape[0]
    co_pad = w_outT.shape[1]
    n_tiles = n_pad // tm

    if resident_a:
        a_spec = pl.BlockSpec(memory_space=pl.ANY)              # full A in HBM
        scratch = [
            pltpu.VMEM((n_pad, n_pad), jnp.bfloat16),           # resident A_hat
            pltpu.VMEM((2, n_pad, c_pad), jnp.bfloat16),        # ping-pong H
            pltpu.VMEM((n_pad, c_pad), jnp.bfloat16),           # HW = H @ W_l
            pltpu.SemaphoreType.DMA((2,)),
        ]
    else:
        a_spec = _buffered_spec((tm, n_pad), lambda l, i: (i, 0), 3)
        scratch = [
            pltpu.VMEM((2, n_pad, c_pad), jnp.bfloat16),        # ping-pong H
            pltpu.VMEM((n_pad, c_pad), jnp.bfloat16),           # HW = H @ W_l
            pltpu.SemaphoreType.DMA((1,)),
        ]

    return pl.pallas_call(
        _make_fused_kernel(tm, resident_a),
        out_shape=jax.ShapeDtypeStruct((g_pad, co_pad), jnp.float32),
        grid_spec=pltpu.PrefetchScalarGridSpec(
            num_scalar_prefetch=0,
            grid=(num_layers, n_tiles),
            in_specs=[
                a_spec,                                                   # A_hat
                pl.BlockSpec(memory_space=pl.ANY),                        # X (HBM)
                pl.BlockSpec((1, c_pad, c_pad), lambda l, i: (l, 0, 0)),  # W_l
                pl.BlockSpec((1, 1, c_pad), lambda l, i: (l, 0, 0)),      # b_l
                pl.BlockSpec((g_pad, n_pad), lambda l, i: (0, 0)),        # P (once)
                pl.BlockSpec((c_pad, co_pad), lambda l, i: (0, 0)),       # W_out^T
                pl.BlockSpec((1, co_pad), lambda l, i: (0, 0)),           # b_out
            ],
            out_specs=pl.BlockSpec((g_pad, co_pad), lambda l, i: (0, 0)),
            scratch_shapes=scratch,
        ),
        compiler_params=pltpu.CompilerParams(
            # Both axes carry true sequential deps through the VMEM-resident H.
            # TODO(synk): v7x dual-TC split via core_map + VMEM_SHARED exchange.
            dimension_semantics=("arbitrary", "arbitrary"),
            vmem_limit_bytes=vmem_limit,
        ),
    )(a_p, x_p, w_stack, b_stack, p_p, w_outT, b_out)


# --------------------------- model construction ----------------------------- #

def init_params(key, in_channels, num_layers, hidden_channels, out_channels):
    """Deterministic synthetic parameters (shapes match the PyTorch module)."""
    params = {"gcn": [], "out": None}
    dims = [in_channels] + [hidden_channels] * num_layers
    for i in range(num_layers):
        key, kw, kb = jax.random.split(key, 3)
        fan_in, fan_out = dims[i], dims[i + 1]
        scale = 1.0 / jnp.sqrt(jnp.float32(fan_in))
        w = jax.random.uniform(kw, (fan_in, fan_out), jnp.float32, -scale, scale)
        b = jax.random.uniform(kb, (1, fan_out), jnp.float32, -scale, scale)
        params["gcn"].append((w, b))
    key, kw, kb = jax.random.split(key, 3)
    scale = 1.0 / jnp.sqrt(jnp.float32(hidden_channels))
    w_out = jax.random.uniform(kw, (out_channels, hidden_channels), jnp.float32,
                               -scale, scale)
    b_out = jax.random.uniform(kb, (1, out_channels), jnp.float32, -scale, scale)
    params["out"] = (w_out, b_out)
    return params


def prepare_params(params):
    """Pad / stack / cast parameters ONCE (bf16 matmul operands, f32 biases)."""
    in_ch = params["gcn"][0][0].shape[0]
    hidden = params["gcn"][0][0].shape[1]
    out_ch = params["out"][0].shape[0]
    c_pad = _round_up(max(in_ch, hidden), 128)       # lane-dense channels
    co_pad = _round_up(out_ch, 128)

    ws, bs = [], []
    for w, b in params["gcn"]:
        ws.append(_pad2(w, c_pad, c_pad))
        bs.append(_pad2(b, 1, c_pad))
    w_stack = jnp.stack(ws).astype(jnp.bfloat16)                 # (L, C, C)
    b_stack = jnp.stack(bs).astype(jnp.float32)                  # (L, 1, C)

    w_out, b_out = params["out"]
    w_outT = _pad2(w_out.T, c_pad, co_pad).astype(jnp.bfloat16)  # bf16 head
    b_out_p = _pad2(b_out, 1, co_pad).astype(jnp.float32)
    return {"w_stack": w_stack, "b_stack": b_stack, "w_outT": w_outT,
            "b_out": b_out_p, "c_pad": c_pad, "co_pad": co_pad, "out_ch": out_ch}


def build_normalized_adjacency(edge_index, num_nodes):
    """Dense D^{-1/2}(A+I)D^{-1/2} (deduped, symmetric, self-loop weight 1).

    Note: PyG's gcn_norm sums duplicate edge weights and does not symmetrize a
    directed edge_index; for simple undirected graphs this matches its output.
    """
    src, dst = edge_index[0], edge_index[1]
    a = jnp.zeros((num_nodes, num_nodes), jnp.float32)
    a = a.at[src, dst].max(1.0)
    a = a.at[dst, src].max(1.0)
    a = jnp.maximum(a, jnp.eye(num_nodes, dtype=jnp.float32))    # self loops
    deg = jnp.sum(a, axis=1)
    dinv = jnp.where(deg > 0, 1.0 / jnp.sqrt(deg), 0.0)
    return a * dinv[:, None] * dinv[None, :]


def build_mean_pool_matrix(batch, num_graphs):
    """(G, N) matrix with row g = 1/|V_g| on nodes of graph g."""
    one_hot = (batch[None, :] == jnp.arange(num_graphs)[:, None]).astype(jnp.float32)
    counts = jnp.maximum(jnp.sum(one_hot, axis=1, keepdims=True), 1.0)
    return one_hot / counts


def discriminator_forward(prepped, x, a_hat, pool_mat, *, tm=None, residency="auto"):
    n = x.shape[0]
    g = pool_mat.shape[0]
    c_pad, co_pad = prepped["c_pad"], prepped["co_pad"]

    vmem_cap = _vmem_capacity_bytes()
    vmem_limit = int(vmem_cap * 0.85)     # leave compiler headroom (v7x ~54 MiB)

    if tm is None:
        tm = _pick_tm(n, vmem_cap)
    n_pad = _round_up(n, tm)
    g_pad = _round_up(g, 8)

    if residency == "auto":
        resident_a = _resident_fits(n_pad, c_pad, g_pad, co_pad, vmem_limit)
    else:
        resident_a = (residency == "resident")

    x_p = _pad2(x, n_pad, c_pad).astype(jnp.bfloat16)
    a_p = _pad2(a_hat, n_pad, n_pad).astype(jnp.bfloat16)
    p_p = _pad2(pool_mat, g_pad, n_pad).astype(jnp.bfloat16)

    out_p = _fused_forward(a_p, x_p, prepped["w_stack"], prepped["b_stack"],
                           p_p, prepped["w_outT"], prepped["b_out"],
                           tm=tm, resident_a=resident_a, vmem_limit=vmem_limit)
    return out_p[:g, :prepped["out_ch"]]


# ------------------------------- references --------------------------------- #

def _reference_bf16(params, x, a_hat, pool_mat):
    """Plain-JAX reference matching the kernel's association & bf16 cast points."""
    bf = lambda t: t.astype(jnp.bfloat16)
    a = bf(a_hat)
    h = bf(x)
    for w, b in params["gcn"]:
        hw = bf(jnp.dot(h, bf(w), preferred_element_type=jnp.float32))
        h = bf(jnp.maximum(jnp.dot(a, hw, preferred_element_type=jnp.float32) + b,
                           0.0))
    pooled = jnp.dot(bf(pool_mat), h, preferred_element_type=jnp.float32)
    w_out, b_out = params["out"]
    return (jnp.dot(bf(pooled), bf(w_out.T), preferred_element_type=jnp.float32)
            + b_out)


def _reference_f32(params, x, a_hat, pool_mat):
    h = x
    for w, b in params["gcn"]:
        h = jnp.maximum(a_hat @ (h @ w) + b, 0.0)
    return (pool_mat @ h) @ params["out"][0].T + params["out"][1]


# ---------------------------------- driver ---------------------------------- #

def _make_graph_batch(key, nodes_per_graph, num_graphs, in_ch, edges_per_graph):
    k_x, k_e = jax.random.split(key)
    n = nodes_per_graph * num_graphs
    x = jax.random.normal(k_x, (n, in_ch), jnp.float32)
    srcs, dsts = [], []
    for gidx in range(num_graphs):
        kk = jax.random.fold_in(k_e, gidx)
        e = jax.random.randint(kk, (2, edges_per_graph),
                               gidx * nodes_per_graph,
                               (gidx + 1) * nodes_per_graph)
        srcs.append(e[0]); dsts.append(e[1])
    edge_index = jnp.stack([jnp.concatenate(srcs),
                            jnp.concatenate(dsts)]).astype(jnp.int32)
    batch = jnp.repeat(jnp.arange(num_graphs, dtype=jnp.int32), nodes_per_graph)
    return x, edge_index, batch


if __name__ == "__main__":
    IN_CH, HIDDEN, OUT_CH, NUM_LAYERS = 8, 32, 4, 3

    key = jax.random.PRNGKey(0)
    k_p, k_g1, k_g2 = jax.random.split(key, 3)

    params = init_params(k_p, IN_CH, NUM_LAYERS, HIDDEN, OUT_CH)
    prepped = prepare_params(params)

    # ---- test 1: tiny batch (2 graphs x 8 nodes) -> auto => resident-A path --
    x1, e1, b1 = _make_graph_batch(k_g1, 8, 2, IN_CH, 12)
    a1 = build_normalized_adjacency(e1, x1.shape[0])
    p1 = build_mean_pool_matrix(b1, 2)
    out1 = jax.block_until_ready(discriminator_forward(prepped, x1, a1, p1))
    assert out1.shape == (2, OUT_CH)
    ref1b = _reference_bf16(params, x1, a1, p1)
    ref1f = _reference_f32(params, x1, a1, p1)
    assert jnp.allclose(out1, ref1b, atol=1e-2, rtol=1e-2), (out1, ref1b)
    assert jnp.allclose(out1, ref1f, atol=5e-2, rtol=5e-2), (out1, ref1f)

    # ---- test 2: 3 graphs x 100 nodes, force the streaming-A fallback --------
    x2, e2, b2 = _make_graph_batch(k_g2, 100, 3, IN_CH, 300)
    a2 = build_normalized_adjacency(e2, x2.shape[0])
    p2 = build_mean_pool_matrix(b2, 3)
    out2 = jax.block_until_ready(
        discriminator_forward(prepped, x2, a2, p2, tm=128, residency="stream"))
    assert out2.shape == (3, OUT_CH)
    ref2b = _reference_bf16(params, x2, a2, p2)
    ref2f = _reference_f32(params, x2, a2, p2)
    assert jnp.allclose(out2, ref2b, atol=1e-2, rtol=1e-2), (out2, ref2b)
    assert jnp.allclose(out2, ref2f, atol=6e-2, rtol=6e-2), (out2, ref2f)

    print("KERNEL_OK")
</pallas_src>

<mosaic_0001>
module attributes {stable_mosaic.version = 11 : i64} {
  func.func @kernel(%arg0: i32, %arg1: i32, %arg2: memref<128x128xbf16, #tpu.memory_space<any>>, %arg3: memref<128x128xbf16, #tpu.memory_space<any>>, %arg4: memref<1x128x128xbf16, #tpu.memory_space<vmem>>, %arg5: memref<1x1x128xf32, #tpu.memory_space<vmem>>, %arg6: memref<8x128xbf16, #tpu.memory_space<vmem>>, %arg7: memref<128x128xbf16, #tpu.memory_space<vmem>>, %arg8: memref<1x128xf32, #tpu.memory_space<vmem>>, %arg9: memref<8x128xf32, #tpu.memory_space<vmem>>, %arg10: memref<128x128xbf16, #tpu.memory_space<vmem>>, %arg11: memref<2x128x128xbf16, #tpu.memory_space<vmem>>, %arg12: memref<128x128xbf16, #tpu.memory_space<vmem>>, %arg13: memref<2x!tpu.dma_semaphore, #tpu.memory_space<semaphore_mem>>) attributes {dimension_semantics = [#tpu.dimension_semantics<arbitrary>, #tpu.dimension_semantics<arbitrary>], iteration_bounds = array<i64: 3, 1>, scalar_prefetch = 0 : i64, scratch_operands = 4 : i64, tpu.core_type = #tpu.core_type<tc>, window_params = [{}, {}, {transform_indices = @transform_2, window_bounds = array<i64: 1, 128, 128>}, {transform_indices = @transform_3, window_bounds = array<i64: 1, 1, 128>}, {pipeline_mode = #tpu.pipeline_mode<synchronous>, transform_indices = @transform_4, window_bounds = array<i64: 8, 128>}, {pipeline_mode = #tpu.pipeline_mode<synchronous>, transform_indices = @transform_5, window_bounds = array<i64: 128, 128>}, {pipeline_mode = #tpu.pipeline_mode<synchronous>, transform_indices = @transform_6, window_bounds = array<i64: 1, 128>}, {pipeline_mode = #tpu.pipeline_mode<synchronous>, transform_indices = @transform_7, window_bounds = array<i64: 8, 128>}]} {
    %c0_i32 = arith.constant 0 : i32
    %0 = arith.cmpi eq, %arg0, %c0_i32 : i32
    %c0_i32_0 = arith.constant 0 : i32
    %1 = arith.cmpi eq, %arg1, %c0_i32_0 : i32
    %2 = arith.andi %0, %1 : i1
    %3 = arith.extui %2 : i1 to i32
    %c0_i32_1 = arith.constant 0 : i32
    %4 = arith.cmpi ne, %3, %c0_i32_1 : i32
    scf.if %4 {
      %c0_i32_25 = arith.constant 0 : i32
      %c0_i32_26 = arith.constant 0 : i32
      %c0_i32_27 = arith.constant 0 : i32
      %c0_i32_28 = arith.constant 0 : i32
      %52 = tpu.memref_slice %arg11[%c0_i32_25, %c0_i32_27, %c0_i32_28] : memref<2x128x128xbf16, #tpu.memory_space<vmem>> -> memref<1x128x128xbf16, #tpu.memory_space<vmem>>
      %53 = tpu.memref_squeeze %52 : memref<1x128x128xbf16, #tpu.memory_space<vmem>> -> memref<128x128xbf16, #tpu.memory_space<vmem>>
      %54 = tpu.memref_slice %arg13[%c0_i32_26] : memref<2x!tpu.dma_semaphore, #tpu.memory_space<semaphore_mem>> -> memref<1x!tpu.dma_semaphore, #tpu.memory_space<semaphore_mem>>
      %55 = tpu.memref_squeeze %54 : memref<1x!tpu.dma_semaphore, #tpu.memory_space<semaphore_mem>> -> memref<!tpu.dma_semaphore, #tpu.memory_space<semaphore_mem>>
      tpu.enqueue_dma source(%arg3 : memref<128x128xbf16, #tpu.memory_space<any>>) target(%53 : memref<128x128xbf16, #tpu.memory_space<vmem>>) target_semaphore(%55 : memref<!tpu.dma_semaphore, #tpu.memory_space<semaphore_mem>>)
      %c1_i32_29 = arith.constant 1 : i32
      %56 = tpu.memref_slice %arg13[%c1_i32_29] : memref<2x!tpu.dma_semaphore, #tpu.memory_space<semaphore_mem>> -> memref<1x!tpu.dma_semaphore, #tpu.memory_space<semaphore_mem>>
      %57 = tpu.memref_squeeze %56 : memref<1x!tpu.dma_semaphore, #tpu.memory_space<semaphore_mem>> -> memref<!tpu.dma_semaphore, #tpu.memory_space<semaphore_mem>>
      tpu.enqueue_dma source(%arg2 : memref<128x128xbf16, #tpu.memory_space<any>>) target(%arg10 : memref<128x128xbf16, #tpu.memory_space<vmem>>) target_semaphore(%57 : memref<!tpu.dma_semaphore, #tpu.memory_space<semaphore_mem>>)
      %c1_i32_30 = arith.constant 1 : i32
      %58 = tpu.memref_slice %arg13[%c1_i32_30] : memref<2x!tpu.dma_semaphore, #tpu.memory_space<semaphore_mem>> -> memref<1x!tpu.dma_semaphore, #tpu.memory_space<semaphore_mem>>
      %59 = tpu.memref_squeeze %58 : memref<1x!tpu.dma_semaphore, #tpu.memory_space<semaphore_mem>> -> memref<!tpu.dma_semaphore, #tpu.memory_space<semaphore_mem>>
      tpu.wait_dma2 semaphore(%59 : memref<!tpu.dma_semaphore, #tpu.memory_space<semaphore_mem>>) src(%arg2 : memref<128x128xbf16, #tpu.memory_space<any>>) dst(%arg10 : memref<128x128xbf16, #tpu.memory_space<vmem>>)
      %c0_i32_31 = arith.constant 0 : i32
      %c0_i32_32 = arith.constant 0 : i32
      %c0_i32_33 = arith.constant 0 : i32
      %c0_i32_34 = arith.constant 0 : i32
      %60 = tpu.memref_slice %arg11[%c0_i32_31, %c0_i32_33, %c0_i32_34] : memref<2x128x128xbf16, #tpu.memory_space<vmem>> -> memref<1x128x128xbf16, #tpu.memory_space<vmem>>
      %61 = tpu.memref_squeeze %60 : memref<1x128x128xbf16, #tpu.memory_space<vmem>> -> memref<128x128xbf16, #tpu.memory_space<vmem>>
      %62 = tpu.memref_slice %arg13[%c0_i32_32] : memref<2x!tpu.dma_semaphore, #tpu.memory_space<semaphore_mem>> -> memref<1x!tpu.dma_semaphore, #tpu.memory_space<semaphore_mem>>
      %63 = tpu.memref_squeeze %62 : memref<1x!tpu.dma_semaphore, #tpu.memory_space<semaphore_mem>> -> memref<!tpu.dma_semaphore, #tpu.memory_space<semaphore_mem>>
      tpu.wait_dma2 semaphore(%63 : memref<!tpu.dma_semaphore, #tpu.memory_space<semaphore_mem>>) src(%arg3 : memref<128x128xbf16, #tpu.memory_space<any>>) dst(%61 : memref<128x128xbf16, #tpu.memory_space<vmem>>)
    } else {
    }
    %c2_i32 = arith.constant 2 : i32
    %c0_i32_2 = arith.constant 0 : i32
    %5 = arith.cmpi eq, %c2_i32, %c0_i32_2 : i32
    %c1_i32 = arith.constant 1 : i32
    %6 = arith.select %5, %c1_i32, %c2_i32 : i32
    %7 = arith.remsi %arg0, %6 : i32
    %c0_i32_3 = arith.constant 0 : i32
    %8 = arith.cmpi ne, %7, %c0_i32_3 : i32
    %c0_i32_4 = arith.constant 0 : i32
    %9 = arith.cmpi slt, %7, %c0_i32_4 : i32
    %c0_i32_5 = arith.constant 0 : i32
    %10 = arith.cmpi slt, %6, %c0_i32_5 : i32
    %11 = arith.xori %9, %10 : i1
    %12 = arith.andi %11, %8 : i1
    %13 = arith.addi %7, %6 : i32
    %14 = arith.select %12, %13, %7 : i32
    %c1_i32_6 = arith.constant 1 : i32
    %15 = arith.addi %arg0, %c1_i32_6 : i32
    %c2_i32_7 = arith.constant 2 : i32
    %c0_i32_8 = arith.constant 0 : i32
    %16 = arith.cmpi eq, %c2_i32_7, %c0_i32_8 : i32
    %c1_i32_9 = arith.constant 1 : i32
    %17 = arith.select %16, %c1_i32_9, %c2_i32_7 : i32
    %18 = arith.remsi %15, %17 : i32
    %c0_i32_10 = arith.constant 0 : i32
    %19 = arith.cmpi ne, %18, %c0_i32_10 : i32
    %c0_i32_11 = arith.constant 0 : i32
    %20 = arith.cmpi slt, %18, %c0_i32_11 : i32
    %c0_i32_12 = arith.constant 0 : i32
    %21 = arith.cmpi slt, %17, %c0_i32_12 : i32
    %22 = arith.xori %20, %21 : i1
    %23 = arith.andi %22, %19 : i1
    %24 = arith.addi %18, %17 : i32
    %25 = arith.select %23, %24, %18 : i32
    %c128_i32 = arith.constant 128 : i32
    %26 = arith.muli %arg1, %c128_i32 : i32
    %27 = tpu.assume_multiple %26, 128 : i32
    %c0_i32_13 = arith.constant 0 : i32
    %28 = arith.cmpi eq, %arg1, %c0_i32_13 : i32
    %29 = arith.extui %28 : i1 to i32
    %c0_i32_14 = arith.constant 0 : i32
    %30 = arith.cmpi ne, %29, %c0_i32_14 : i32
    scf.if %30 {
      %52 = arith.index_cast %14 : i32 to index
      %c0_25 = arith.constant 0 : index
      %c0_26 = arith.constant 0 : index
      %53 = vector.load %arg11[%52, %c0_25, %c0_26] : memref<2x128x128xbf16, #tpu.memory_space<vmem>>, vector<1x128x128xbf16>
      %54 = vector.shape_cast %53 : vector<1x128x128xbf16> to vector<128x128xbf16>
      %c0_27 = arith.constant 0 : index
      %c0_28 = arith.constant 0 : index
      %c0_29 = arith.constant 0 : index
      %55 = vector.load %arg4[%c0_27, %c0_28, %c0_29] : memref<1x128x128xbf16, #tpu.memory_space<vmem>>, vector<1x128x128xbf16>
      %56 = vector.shape_cast %55 : vector<1x128x128xbf16> to vector<128x128xbf16>
      %cst_30 = arith.constant dense<0.000000e+00> : vector<128x128xf32>
      %57 = tpu.matmul %54, %56, %cst_30 {dimension_numbers = #tpu.dot_dimension_numbers<[1], [0], [0], [1], [0, 0, 1, 1], [], []>} : vector<128x128xbf16>, vector<128x128xbf16>, vector<128x128xf32> -> vector<128x128xf32>
      %58 = arith.truncf %57 : vector<128x128xf32> to vector<128x128xbf16>
      %c0_31 = arith.constant 0 : index
      %c0_32 = arith.constant 0 : index
      %59 = vector.load %arg12[%c0_31, %c0_32] : memref<128x128xbf16, #tpu.memory_space<vmem>>, vector<128x128xbf16>
      tpu.vector_store %arg12[%c0_31, %c0_32], %58 {strides = array<i32>} : memref<128x128xbf16, #tpu.memory_space<vmem>>, vector<128x128xbf16>,
    } else {
    }
    %31 = arith.index_cast %27 : i32 to index
    %c0 = arith.constant 0 : index
    %32 = vector.load %arg10[%31, %c0] : memref<128x128xbf16, #tpu.memory_space<vmem>>, vector<128x128xbf16>
    %c0_15 = arith.constant 0 : index
    %c0_16 = arith.constant 0 : index
    %33 = vector.load %arg12[%c0_15, %c0_16] : memref<128x128xbf16, #tpu.memory_space<vmem>>, vector<128x128xbf16>
    %cst = arith.constant dense<0.000000e+00> : vector<128x128xf32>
    %34 = tpu.matmul %32, %33, %cst {dimension_numbers = #tpu.dot_dimension_numbers<[1], [0], [0], [1], [0, 0, 1, 1], [], []>} : vector<128x128xbf16>, vector<128x128xbf16>, vector<128x128xf32> -> vector<128x128xf32>
    %c0_17 = arith.constant 0 : index
    %c0_18 = arith.constant 0 : index
    %c0_19 = arith.constant 0 : index
    %35 = vector.load %arg5[%c0_17, %c0_18, %c0_19] : memref<1x1x128xf32, #tpu.memory_space<vmem>>, vector<1x1x128xf32>
    %36 = vector.shape_cast %35 : vector<1x1x128xf32> to vector<1x128xf32>
    %37 = vector.broadcast %36 : vector<1x128xf32> to vector<128x128xf32>
    %38 = arith.addf %34, %37 : vector<128x128xf32>
    %cst_20 = arith.constant 0.000000e+00 : f32
    %39 = vector.broadcast %cst_20 : f32 to vector<128x128xf32>
    %40 = arith.maximumf %38, %39 : vector<128x128xf32>
    %41 = arith.truncf %40 : vector<128x128xf32> to vector<128x128xbf16>
    %42 = arith.index_cast %25 : i32 to index
    %43 = arith.index_cast %27 : i32 to index
    %c0_21 = arith.constant 0 : index
    %44 = vector.load %arg11[%42, %43, %c0_21] : memref<2x128x128xbf16, #tpu.memory_space<vmem>>, vector<1x128x128xbf16>
    %45 = vector.shape_cast %44 : vector<1x128x128xbf16> to vector<128x128xbf16>
    %46 = vector.shape_cast %41 : vector<128x128xbf16> to vector<1x128x128xbf16>
    tpu.vector_store %arg11[%42, %43, %c0_21], %46 {strides = array<i32>} : memref<2x128x128xbf16, #tpu.memory_space<vmem>>, vector<1x128x128xbf16>,
    %c2_i32_22 = arith.constant 2 : i32
    %47 = arith.cmpi eq, %arg0, %c2_i32_22 : i32
    %c0_i32_23 = arith.constant 0 : i32
    %48 = arith.cmpi eq, %arg1, %c0_i32_23 : i32
    %49 = arith.andi %47, %48 : i1
    %50 = arith.extui %49 : i1 to i32
    %c0_i32_24 = arith.constant 0 : i32
    %51 = arith.cmpi ne, %50, %c0_i32_24 : i32
    scf.if %51 {
      %c0_25 = arith.constant 0 : index
      %c0_26 = arith.constant 0 : index
      %52 = vector.load %arg6[%c0_25, %c0_26] : memref<8x128xbf16, #tpu.memory_space<vmem>>, vector<8x128xbf16>
      %53 = arith.index_cast %25 : i32 to index
      %c0_27 = arith.constant 0 : index
      %c0_28 = arith.constant 0 : index
      %54 = vector.load %arg11[%53, %c0_27, %c0_28] : memref<2x128x128xbf16, #tpu.memory_space<vmem>>, vector<1x128x128xbf16>
      %55 = vector.shape_cast %54 : vector<1x128x128xbf16> to vector<128x128xbf16>
      %cst_29 = arith.constant dense<0.000000e+00> : vector<8x128xf32>
      %56 = tpu.matmul %52, %55, %cst_29 {dimension_numbers = #tpu.dot_dimension_numbers<[1], [0], [0], [1], [0, 0, 1, 1], [], []>} : vector<8x128xbf16>, vector<128x128xbf16>, vector<8x128xf32> -> vector<8x128xf32>
      %57 = arith.truncf %56 : vector<8x128xf32> to vector<8x128xbf16>
      %c0_30 = arith.constant 0 : index
      %c0_31 = arith.constant 0 : index
      %58 = vector.load %arg7[%c0_30, %c0_31] : memref<128x128xbf16, #tpu.memory_space<vmem>>, vector<128x128xbf16>
      %cst_32 = arith.constant dense<0.000000e+00> : vector<8x128xf32>
      %59 = tpu.matmul %57, %58, %cst_32 {dimension_numbers = #tpu.dot_dimension_numbers<[1], [0], [0], [1], [0, 0, 1, 1], [], []>} : vector<8x128xbf16>, vector<128x128xbf16>, vector<8x128xf32> -> vector<8x128xf32>
      %c0_33 = arith.constant 0 : index
      %c0_34 = arith.constant 0 : index
      %60 = vector.load %arg8[%c0_33, %c0_34] : memref<1x128xf32, #tpu.memory_space<vmem>>, vector<1x128xf32>
      %61 = vector.broadcast %60 : vector<1x128xf32> to vector<8x128xf32>
      %62 = arith.addf %59, %61 : vector<8x128xf32>
      %c0_35 = arith.constant 0 : index
      %c0_36 = arith.constant 0 : index
      %63 = vector.load %arg9[%c0_35, %c0_36] : memref<8x128xf32, #tpu.memory_space<vmem>>, vector<8x128xf32>
      tpu.vector_store %arg9[%c0_35, %c0_36], %62 {strides = array<i32>} : memref<8x128xf32, #tpu.memory_space<vmem>>, vector<8x128xf32>,
    } else {
    }
    return
  }
  func.func @transform_2(%arg0: i32, %arg1: i32) -> (i32, i32, i32) {
    %c0_i32 = arith.constant 0 : i32
    %c0_i32_0 = arith.constant 0 : i32
    %c0_i32_1 = arith.constant 0 : i32
    return %arg0, %c0_i32, %c0_i32_0 : i32, i32, i32
  }
  func.func @transform_3(%arg0: i32, %arg1: i32) -> (i32, i32, i32) {
    %c0_i32 = arith.constant 0 : i32
    %c0_i32_0 = arith.constant 0 : i32
    %c0_i32_1 = arith.constant 0 : i32
    return %arg0, %c0_i32, %c0_i32_0 : i32, i32, i32
  }
  func.func @transform_4(%arg0: i32, %arg1: i32) -> (i32, i32) {
    %c0_i32 = arith.constant 0 : i32
    %c0_i32_0 = arith.constant 0 : i32
    %c0_i32_1 = arith.constant 0 : i32
    return %c0_i32, %c0_i32_0 : i32, i32
  }
  func.func @transform_5(%arg0: i32, %arg1: i32) -> (i32, i32) {
    %c0_i32 = arith.constant 0 : i32
    %c0_i32_0 = arith.constant 0 : i32
    %c0_i32_1 = arith.constant 0 : i32
    return %c0_i32, %c0_i32_0 : i32, i32
  }
  func.func @transform_6(%arg0: i32, %arg1: i32) -> (i32, i32) {
    %c0_i32 = arith.constant 0 : i32
    %c0_i32_0 = arith.constant 0 : i32
    %c0_i32_1 = arith.constant 0 : i32
    return %c0_i32, %c0_i32_0 : i32, i32
  }
  func.func @transform_7(%arg0: i32, %arg1: i32) -> (i32, i32) {
    %c0_i32 = arith.constant 0 : i32
    %c0_i32_0 = arith.constant 0 : i32
    %c0_i32_1 = arith.constant 0 : i32
    return %c0_i32, %c0_i32_0 : i32, i32
  }
}

</mosaic_0001>

<bundles_post_ra>
// kernel: tpu_custom_call.1
= control target key start
LH: loop header
LB: loop body
LE: loop exit
PB: predicated region body
PF: predicated region fallthrough
CT: control target
= control target key end

     0   :  { %12 = vsyncpa [#allocation7], 0  ;;  %s2305_s0 = inlined_call_operand.hbm [shape: bf16[128,128], index: 0, kind: input, shape index: {}]   ;;  %s2306_s1 = inlined_call_operand.hbm [shape: bf16[128,128], index: 1, kind: input, shape index: {}]   ;;  %s2307_s2 = inlined_call_operand.hbm [shape: bf16[3,128,128], index: 2, kind: input, shape index: {}]   ;;  %s2308_s3 = inlined_call_operand.vmem [shape: f32[3,1,128], index: 3, kind: input, shape index: {}]   ;;  %s2309_s4 = inlined_call_operand.vmem [shape: bf16[8,128], index: 4, kind: input, shape index: {}]   ;;  %s2310_s5 = inlined_call_operand.hbm [shape: bf16[128,128], index: 5, kind: input, shape index: {}]   ;;  %s2311_s6 = inlined_call_operand.vmem [shape: f32[1,128], index: 6, kind: input, shape index: {}]   ;;  %s2312_s7 = inlined_call_operand.hbm [shape: f32[8,128], index: 7, kind: output, shape index: {}]  }
   0x1   :  { %14 = vsyncpa [#allocation7 + $0x1], 0 }
   0x2   :  { %15 = vsyncpa [#allocation10], 0 }
   0x3   :  { %16 = vsyncpa [#allocation8], 0  ;;  %s2087_s24 = smov 0   ;;  %s2089_s25 = smov 0  }
   0x4   :  { %s2091_s26 = smov 0   ;;  %s2093_s27 = smov 0  }
   0x5   :  { %s2095_s28 = smov 0   ;;  %s2097_s29 = smov 0  }
   0x6 LB: > { %s2313_s30 = sadd.s32 4294967295, %s2036_s29   ;;  %p54_p0 = scmp.ne.s32.totalorder %s2020_s25, %s2016_s24  ;;  %s2036_s29 = sphi %s2097_s29, %s22_s29   ;;  %s2032_s28 = sphi %s2095_s28, %s2329_s28   ;;  %s2028_s27 = sphi %s2093_s27, %s2328_s27   ;;  %s2024_s26 = sphi %s2091_s26, %s2327_s26   ;;  %s2020_s25 = sphi %s2089_s25, %s2326_s25   ;;  %s2016_s24 = sphi %s2087_s24, %s2325_s24  }
   0x7   : > { %p2119_p1 = scmp.eq.s32.totalorder %s2313_s30, 0  ;;  %p1317_p2 = scmp.ge.s32.totalorder %s2036_s29, 1 }
   0x8   : > { %p175_p3 = scmp.lt.s32.totalorder %s2036_s29, 4  ;;  %s2038_s11 = smov [#allocation9]  }
   0x9   : > { %p2127_p4 = por %p2119_p1, %p54_p0  ;;  %s190_s12 = sshll.u32 %s2038_s11, 4  ;;  %s191_s12 = int_to_ptr.vmem [resolvable:$true] %s190_s12 }
   0xa   : > { %p2131_p5 = pnand %p1317_p2, %p175_p3  ;;  %s34_s14 = sadd.s32 1, %s2032_s28 }
   0xb   : > { %s1855_s15 = scalar_lea.vmem %s191_s12, 1024  ;;  %p1863_p12 = scmp.lt.s32.totalorder %s191_s12, %s191_s12 }
   0xc   : > { %p1727_p6 = pneg %p2131_p5  ;;  %p1856_p9 = scmp.ne.s32.totalorder %s191_s12, %s1855_s15 }
   0xd   : > { %p1864_p13 = scmp.lt.s32.totalorder %s1855_s15, %s1855_s15 }
   0xe   : > { %p2139_p7 = pnand %p1727_p6, %p2119_p1 }
   0xf   : > { %p1865_p0 = por %p1864_p13, %p1863_p12 }
  0x10   : > { %p1846_p8 = pneg %p2139_p7 }
  0x12   : > { %p1858_p10 = pnand %p1856_p9, %p1846_p8 }
  0x14   : > { %p1859_p11 = pneg %p1858_p10 }
  0x16   : > { %p1866_p2 = pnand %p1865_p0, %p1859_p11 }
  0x18   : > { %1869 = shalt.err (!%p1866_p2)
}
  0x19   : > { %s2314_s16 = smov 64   ;;  %s2315_s17 = smov 4  }
  0x1a   : > { %1730 = dma.hbm_to_vmem [thread:$0]  (!%p2139_p7), %s2310_s5, 1024, %s191_s12, [#allocation10], %s2314_s16, %s2314_s16, %s2315_s17  }
  0x1b   : > { %p36_p3 = scmp.ge.s32.totalorder %s34_s14, 3  ;;  %s41_s20 = sadd.s32 1, %s2024_s26 }
  0x1c   : > { %p48_p6 = scmp.ne.s32.totalorder %s2024_s26, %s2020_s25  ;;  %p49_p8 = scmp.eq.s32.totalorder %s2036_s29, 0 }
  0x1d   : > { %s2331_s14 = smov (%p36_p3, %s34_s14), 0  ;;  %p1736_p10 = scmp.lt.s32.totalorder %s2036_s29, 3 }
  0x1e   : > { %p50_p9 = por %p49_p8, %p48_p6  ;;  %s38_s21 = ssub.s32 %s2032_s28, %s2331_s14 }
  0x1f   : > { %s207_s22 = sand.u32 1, %s2024_s26   ;;  %p39_p11 = scmp.eq.s32.totalorder %s38_s21, 0 }
  0x20   : > { %s1320_s23 = sshll.u32 %s207_s22, 6  ;;  %s1427_s24 = sshll.u32 %s2032_s28, 10 }
  0x21   : > { %s2166_s11 = scalar_select %p39_p11, %s2024_s26, %s41_s20  }
  0x22   : > { %s217_s12 = scalar_lea.hbm %s2307_s2, %s1427_s24  ;;  %s211_s18 = scalar_lea.vmem [#allocation6], %s1320_s23 }
  0x23   : > { %s218_s19 = sshll.u32 %s211_s18, 4  ;;  %p2171_p7 = pnand %p1736_p10, %p50_p9  ;;  %s219_s19 = int_to_ptr.vmem [resolvable:$true] %s218_s19 }
  0x24   : > { %s208_s16 = scalar_lea.sflag [#allocation7], %s207_s22  ;;  %s1883_s21 = scalar_lea.vmem %s219_s19, 1024 }
  0x25   : > { %p1872_p12 = pneg %p2171_p7  ;;  %p1884_p13 = scmp.ne.s32.totalorder %s219_s19, %s1883_s21 }
  0x26   : > { %s2041_s20 = smov [#allocation6]  }
  0x27   : > { %p1886_p0 = pnand %p1884_p13, %p1872_p12  ;;  %s1888_s17 = sshll.u32 %s2041_s20, 4  ;;  %s1889_s17 = int_to_ptr.vmem [resolvable:$false] %s1888_s17 }
  0x28   : > { %s1890_s13 = scalar_lea.vmem %s1889_s17, 2048  ;;  %p1891_p3 = scmp.lt.s32.totalorder %s219_s19, %s1889_s17 }
  0x29   : > { %p1887_p2 = pneg %p1886_p0  ;;  %p1892_p6 = scmp.lt.s32.totalorder %s1890_s13, %s1883_s21 }
  0x2b   : > { %p1893_p8 = por %p1892_p6, %p1891_p3 }
  0x2d   : > { %p1894_p9 = pnand %p1893_p8, %p1887_p2 }
  0x2f   : > { %1897 = shalt.err (!%p1894_p9)
}
  0x30   : > { %s2321_s23 = smov 4   ;;  %s2322_s24 = smov 64  }
  0x31   : > { %1734 = dma.hbm_to_vmem [thread:$0]  (!%p2171_p7), %s217_s12, 1024, %s219_s19, %s208_s16, %s2322_s24, %s2322_s24, %s2321_s23  }
  0x32   : > { %236 = sbr.rel (%p2131_p5) target bundleno = 1058 (0x422), region = 40  ;;  %s238_s22 = sand.u32 (!%p2131_p5), 1, %s2020_s25  }
  0x33   : > { %s1324_s15 = sshll.u32 (!%p2131_p5), %s238_s22, 6  ;;  %s239_s18 = scalar_lea.sflag (!%p2131_p5), [#allocation7], %s238_s22 }
  0x34   : > { %s2185_s20 = scalar_lea.vmem (!%p2131_p5), [#allocation6], %s1324_s15 }
  0x37   : > { %1995 = dma.done.wait (%p2127_p4), %s239_s18, 1024  }
  0x38   : > { %1997 = vsyncadd (%p2127_p4), %s239_s18, 4294966272 }
  0x39   : > { %1999 = dma.done.wait (%p2119_p1), [#allocation10], 1024  }
  0x3a   : > { %2001 = vsyncadd (%p2119_p1), [#allocation10], 4294966272  ;;  %p271_p5 = scmp.lt.s32.totalorder %s2028_s27, 2  ;;  %p275_p10 = scmp.eq.s32.totalorder %s2028_s27, 0 }
  0x3b   : > { %s2042_s10 = smov [#allocation3]   ;;  %s2043_s17 = smov [#allocation2]  }
  0x3c   : > { %s2198_s30 = scalar_select %p271_p5, %s2028_s27, 2 }
  0x3d   : > { %s288_s16 = sshll.u32 %s2042_s10, 4  ;;  %s300_s9 = sshll.u32 %s2043_s17, 4  ;;  %s289_s16 = int_to_ptr.vmem [resolvable:$true] %s288_s16  ;;  %s301_s9 = int_to_ptr.vmem [resolvable:$true] %s300_s9 }
  0x3e   : > { %s273_s21 = scalar_lea.vmem %s2308_s3, %s2198_s30  ;;  %s1908_s8 = scalar_lea.vmem %s289_s16, 1024 }
  0x3f   : > { %p1909_p1 = scmp.ne.s32.totalorder %s289_s16, %s1908_s8  ;;  %s1914_s13 = scalar_lea.vmem %s289_s16, 2048 }
  0x40   : > { %p1915_p7 = scmp.lt.s32.totalorder %s289_s16, %s289_s16  ;;  %p1916_p12 = scmp.lt.s32.totalorder %s1914_s13, %s1908_s8 }
  0x41   : > { %p1910_p4 = pnand %p1909_p1, %p275_p10 }
  0x42   : > { %p1917_p13 = por %p1916_p12, %p1915_p7 }
  0x43   : > { %p1911_p11 = pneg %p1910_p4 }
  0x45   : > { %p1918_p0 = pnand %p1917_p13, %p1911_p11 }
  0x47   : > { %1921 = shalt.err (!%p1918_p0)  }
  0x48   : > { %1719 = dma.hbm_to_vmem [thread:$0]  (%p275_p10), %s2306_s1, 1024, %s289_s16, [#allocation5] }
  0x49   : > { %s1932_s22 = scalar_lea.vmem %s301_s9, 1024  ;;  %p1939_p8 = scmp.lt.s32.totalorder %s301_s9, %s301_s9 }
  0x4a   : > { %p1933_p2 = scmp.ne.s32.totalorder %s301_s9, %s1932_s22  ;;  %p1940_p9 = scmp.lt.s32.totalorder %s1932_s22, %s1932_s22 }
  0x4c   : > { %p1934_p3 = pnand %p1933_p2, %p275_p10  ;;  %p1941_p5 = por %p1940_p9, %p1939_p8 }
  0x4e   : > { %p1935_p6 = pneg %p1934_p3 }
  0x50   : > { %p1942_p1 = pnand %p1941_p5, %p1935_p6 }
  0x52   : > { %1945 = shalt.err (!%p1942_p1)  }
  0x53   : > { %1720 = dma.hbm_to_vmem [thread:$0]  (%p275_p10), %s2305_s0, 1024, %s301_s9, [#allocation5 + $0x1] }
  0x54   : > { %2003 = dma.done.wait (%p275_p10), [#allocation5 + $0x1], 1024 }
  0x55   : > { %2005 = vsyncadd (%p275_p10), [#allocation5 + $0x1], 4294966272 }
  0x56   : > { %2007 = dma.done.wait (%p275_p10), [#allocation5], 1024 }
  0x57   : > { %2009 = vsyncadd (%p275_p10), [#allocation5], 4294966272  ;;  %p310_p4 = scmp.lt.s32.totalorder %s2028_s27, 0  ;;  %s311_s10 = ssub.s32 0, %s2028_s27  ;;  %v1796_v0 = vld [vmem:[%s2185_s20 + $0x38] sm:$0xff]   ;;  %v1797_v1 = vld [vmem:[%s2185_s20 + $0x30] sm:$0xff]  }
  0x58   : > { %s1327_s16 = smin.u32 %s2028_s27, %s311_s10  ;;  %1609 = vmatprep.subr.bf16.mxu0 %v1796_v0  ;;  %v1798_v2 = vld [vmem:[%s2185_s20 + $0x28] sm:$0xff]   ;;  %v1799_v3 = vld [vmem:[%s2185_s20 + $0x20] sm:$0xff]   ;;  %v1800_v5 = vld [vmem:[%s2185_s20 + $0x18] sm:$0xff]   ;;  %p983_p10 = scmp.eq.s32.totalorder %s2028_s27, 2 }
  0x59   : > { %s313_s17 = sand.u32 1, %s1327_s16   ;;  %1610 = vmatpush3.bf16.msra.mxu0 %v1796_v0  ;;  %v1801_v6 = vld [vmem:[%s2185_s20 + $0x10] sm:$0xff]   ;;  %v1802_v7 = vld [vmem:[%s2185_s20 + $0x8] sm:$0xff]   ;;  %v1803_v8 = vld [vmem:[%s2185_s20] sm:$0xff]   ;;  %s322_s20 = sadd.s32 1, %s2028_s27  ;;  %vm2045_vm0 = vmmov (%p983_p10), 0  }
  0x5a   : > { %s314_s9 = ssub.s32 0, %s313_s17  ;;  %1611 = vmatprep.subr.bf16.mxu0 %v1797_v1  ;;  %v1820_v16 = vld [vmem:[#allocation2] sm:$0xff]   ;;  %v1821_v49 = vld [vmem:[#allocation2 + $0x8] sm:$0xff]   ;;  %v1822_v50 = vld [vmem:[#allocation2 + $0x10] sm:$0xff]   ;;  %s324_s13 = ssub.s32 0, %s322_s20 }
  0x5b   : > { %s2333_s9 = smov (!%p310_p4, %s314_s9), %s313_s17  ;;  %1657 = vmatprep.mubr.bf16.mxu1 %v1820_v16  ;;  %v1823_v51 = vld [vmem:[#allocation2 + $0x18] sm:$0xff]   ;;  %v1824_v52 = vld [vmem:[#allocation2 + $0x20] sm:$0xff]   ;;  %v1825_v53 = vld [vmem:[#allocation2 + $0x28] sm:$0xff]   ;;  %s1330_s23 = smin.u32 %s324_s13, %s322_s20 }
  0x5c   : > { %p1329_p11 = scmp.lt.s32.totalorder %s2333_s9, 0  ;;  %s320_s12 = sadd.s32 2, %s2333_s9  ;;  %v1826_v54 = vld [vmem:[#allocation2 + $0x30] sm:$0xff]   ;;  %v1827_v55 = vld [vmem:[#allocation2 + $0x38] sm:$0xff]   ;;  %v1367_v57 = vld [vmem:[%s273_s21] ss:$0 sm:$0xff] }
  0x5d   : > { %1612 = vmatpush3.bf16.msra.mxu0 %v1797_v1  ;;  %s326_s24 = sand.u32 1, %s1330_s23   ;;  %p323_p7 = scmp.lt.s32.totalorder %s322_s20, 0 }
  0x5e   : > { %s2335_s12 = smov (!%p1329_p11, %s320_s12), %s2333_s9  ;;  %1613 = vmatprep.subr.bf16.mxu0 %v1798_v2  ;;  %s327_s22 = ssub.s32 0, %s326_s24 }
  0x5f   : > { %s1429_s19 = sshll.u32 %s2335_s12, 6  ;;  %s2337_s22 = smov (!%p323_p7, %s327_s22), %s326_s24 }
  0x60   : > { %s341_s8 = scalar_lea.vmem [#allocation3], %s1429_s19  ;;  %p1332_p12 = scmp.lt.s32.totalorder %s2337_s22, 0 }
  0x61   : > { %v1804_v4 = vld [vmem:[%s341_s8] sm:$0xff]   ;;  %1614 = vmatpush3.bf16.msra.mxu0 %v1798_v2  ;;  %v1805_v9 = vld [vmem:[%s341_s8 + $0x8] sm:$0xff]   ;;  %v1806_v10 = vld [vmem:[%s341_s8 + $0x10] sm:$0xff]   ;;  %s333_s15 = sadd.s32 2, %s2337_s22 }
  0x62   : > { %1625 = vmatprep.mubr.bf16.mxu0 %v1804_v4  ;;  %1615 = vmatprep.subr.bf16.mxu0 %v1799_v3  ;;  %v1807_v11 = vld [vmem:[%s341_s8 + $0x18] sm:$0xff]   ;;  %v1808_v12 = vld [vmem:[%s341_s8 + $0x20] sm:$0xff]   ;;  %v1809_v13 = vld [vmem:[%s341_s8 + $0x28] sm:$0xff]   ;;  %s2339_s15 = smov (!%p1332_p12, %s333_s15), %s2337_s22 }
  0x63   : > { %v1810_v14 = vld [vmem:[%s341_s8 + $0x30] sm:$0xff]   ;;  %v1811_v15 = vld [vmem:[%s341_s8 + $0x38] sm:$0xff]   ;;  %s1462_s16 = sshll.u32 %s2339_s15, 6 }
  0x64   : > { %s2244_s17 = scalar_lea.vmem [#allocation3], %s1462_s16 }
  0x65   : > { %1616 = vmatpush3.bf16.msra.mxu0 %v1799_v3 }
  0x66   : > { %1617 = vmatprep.subr.bf16.mxu0 %v1800_v5 }
  0x69   : > { %1618 = vmatpush3.bf16.msra.mxu0 %v1800_v5 }
  0x6a   : > { %1619 = vmatprep.subr.bf16.mxu0 %v1801_v6 }
  0x6d   : > { %1620 = vmatpush3.bf16.msra.mxu0 %v1801_v6 }
  0x6e   : > { %1621 = vmatprep.subr.bf16.mxu0 %v1802_v7 }
  0x71   : > { %1622 = vmatpush3.bf16.msra.mxu0 %v1802_v7 }
  0x72   : > { %1623 = vmatprep.subr.bf16.mxu0 %v1803_v8 }
  0x75   : > { %1624 = vmatpush3.bf16.msra.mxu0 %v1803_v8 }
  0x78   : > { %1626 = vmatmul.mubr.bf16.vlgmr.msra.gmra.mxu0 %v1805_v9 }
  0x79   : > { %1629 = vmatprep.mubr.bf16.mxu0 %v1806_v10 }
  0x80   : > { %1630 = vmatmul.mubr.bf16.gmra.mxu0 %v1807_v11 }
  0x81   : > { %1633 = vmatprep.mubr.bf16.mxu0 %v1808_v12 }
  0x88   : > { %1634 = vmatmul.mubr.bf16.gmra.mxu0 %v1809_v13 }
  0x89   : > { %1637 = vmatprep.mubr.bf16.mxu0 %v1810_v14 }
  0x90   : > { %1638 = vmatmul.mubr.bf16.gmra.mxu0 %v1811_v15 }
 0x138   : > { %v1627_v17 = vpop.f32.mrf.mxu0 }
 0x13a   : > { %v504_v18 = vpop.f32.mrf.mxu0 }
 0x13c   : > { %v1628_v19 = vpop.f32.mrf.mxu0 }
 0x13d   : > { %v1473_v20 = vpack.c.bf16 %v1628_v19, %v1627_v17 }
 0x13e   : > { %v507_v21 = vpop.f32.mrf.mxu0 }
 0x13f   : > { %1545 = vst [vmem:[#allocation4 + $0x8] sm:$0xff] %v1473_v20   ;;  %v1468_v22 = vpack.c.bf16 %v507_v21, %v504_v18 }
 0x140   : > { %v1631_v23 = vpop.f32.mrf.mxu0 }
 0x141   : > { %1469 = vst [vmem:[#allocation4] sm:$0xff] %v1468_v22  }
 0x142   : > { %v520_v24 = vpop.f32.mrf.mxu0 }
 0x144   : > { %v1632_v25 = vpop.f32.mrf.mxu0 }
 0x145   : > { %v1483_v26 = vpack.c.bf16 %v1632_v25, %v1631_v23 }
 0x146   : > { %v523_v27 = vpop.f32.mrf.mxu0  ;;  %v1818_v47 = vld [vmem:[#allocation4 + $0x8] sm:$0xff]  }
 0x147   : > { %1547 = vst [vmem:[#allocation4 + $0x18] sm:$0xff] %v1483_v26   ;;  %v1478_v28 = vpack.c.bf16 %v523_v27, %v520_v24 }
 0x148   : > { %v1635_v29 = vpop.f32.mrf.mxu0  ;;  %v1819_v48 = vld [vmem:[#allocation4] sm:$0xff]  }
 0x149   : > { %1546 = vst [vmem:[#allocation4 + $0x10] sm:$0xff] %v1478_v28  }
 0x14a   : > { %v536_v30 = vpop.f32.mrf.mxu0 }
 0x14c   : > { %v1636_v31 = vpop.f32.mrf.mxu0 }
 0x14d   : > { %v1493_v32 = vpack.c.bf16 %v1636_v31, %v1635_v29 }
 0x14e   : > { %v539_v33 = vpop.f32.mrf.mxu0  ;;  %v1816_v45 = vld [vmem:[#allocation4 + $0x18] sm:$0xff]  }
 0x14f   : > { %1549 = vst [vmem:[#allocation4 + $0x28] sm:$0xff] %v1493_v32   ;;  %v1488_v34 = vpack.c.bf16 %v539_v33, %v536_v30 }
 0x150   : > { %v1639_v35 = vpop.f32.mrf.mxu0  ;;  %v1817_v46 = vld [vmem:[#allocation4 + $0x10] sm:$0xff]  }
 0x151   : > { %1548 = vst [vmem:[#allocation4 + $0x20] sm:$0xff] %v1488_v34  }
 0x152   : > { %v552_v36 = vpop.f32.mrf.mxu0 }
 0x154   : > { %v1640_v37 = vpop.f32.mrf.mxu0 }
 0x155   : > { %v1503_v38 = vpack.c.bf16 %v1640_v37, %v1639_v35 }
 0x156   : > { %v555_v39 = vpop.f32.mrf.mxu0  ;;  %v1814_v43 = vld [vmem:[#allocation4 + $0x28] sm:$0xff]  }
 0x157   : > { %1551 = vst [vmem:[#allocation4 + $0x38] sm:$0xff] %v1503_v38   ;;  %v1498_v40 = vpack.c.bf16 %v555_v39, %v552_v36 }
 0x158   : > { %v1815_v44 = vld [vmem:[#allocation4 + $0x20] sm:$0xff]  }
 0x159   : > { %1550 = vst [vmem:[#allocation4 + $0x30] sm:$0xff] %v1498_v40  }
 0x15e   : > { %v1812_v41 = vld [vmem:[#allocation4 + $0x38] sm:$0xff]  }
 0x15f   : > { %1641 = vmatprep.subr.bf16.mxu1 %v1812_v41 }
 0x160   : > { %v1813_v42 = vld [vmem:[#allocation4 + $0x30] sm:$0xff]   ;;  %1642 = vmatpush3.bf16.msra.mxu1 %v1812_v41 }
 0x161   : > { %1643 = vmatprep.subr.bf16.mxu1 %v1813_v42 }
 0x164   : > { %1644 = vmatpush3.bf16.msra.mxu1 %v1813_v42 }
 0x165   : > { %1645 = vmatprep.subr.bf16.mxu1 %v1814_v43 }
 0x168   : > { %1646 = vmatpush3.bf16.msra.mxu1 %v1814_v43 }
 0x169   : > { %1647 = vmatprep.subr.bf16.mxu1 %v1815_v44 }
 0x16c   : > { %1648 = vmatpush3.bf16.msra.mxu1 %v1815_v44 }
 0x16d   : > { %1649 = vmatprep.subr.bf16.mxu1 %v1816_v45 }
 0x170   : > { %1650 = vmatpush3.bf16.msra.mxu1 %v1816_v45 }
 0x171   : > { %1651 = vmatprep.subr.bf16.mxu1 %v1817_v46 }
 0x174   : > { %1652 = vmatpush3.bf16.msra.mxu1 %v1817_v46 }
 0x175   : > { %1653 = vmatprep.subr.bf16.mxu1 %v1818_v47 }
 0x178   : > { %1654 = vmatpush3.bf16.msra.mxu1 %v1818_v47 }
 0x179   : > { %1655 = vmatprep.subr.bf16.mxu1 %v1819_v48 }
 0x17c   : > { %1656 = vmatpush3.bf16.msra.mxu1 %v1819_v48 }
 0x17f   : > { %1658 = vmatmul.mubr.bf16.vlgmr.msra.gmra.mxu1 %v1821_v49 }
 0x180   : > { %1661 = vmatprep.mubr.bf16.mxu1 %v1822_v50  ;;  %v2044_v50 = vmov (%p983_p10), 0.0  }
 0x181   : > { %1673 = vmatprep.subr.bf16.mxu0 (%p983_p10), %v2044_v50  ;;  %1693 = vmatprep.subr.bf16.mxu1 (%p983_p10), %v2044_v50 }
 0x182   : > { %1689 = vmatprep.mubr.msk.bf16.mxu0 (%p983_p10), %vm2045_vm0, %v2044_v50 }
 0x187   : > { %1662 = vmatmul.mubr.bf16.gmra.mxu1 %v1823_v51 }
 0x188   : > { %1665 = vmatprep.mubr.bf16.mxu1 %v1824_v52 }
 0x18f   : > { %1666 = vmatmul.mubr.bf16.gmra.mxu1 %v1825_v53  ;;  %v1836_v53 = vld [vmem:[#allocation9 + $0x38] sm:$0xff] (%p983_p10)  }
 0x190   : > { %1669 = vmatprep.mubr.bf16.mxu1 %v1826_v54  ;;  %1694 = vmatpush3.bf16.msra.mxu1 (%p983_p10), %v1836_v53 }
 0x191   : > { %1695 = vmatprep.subr.bf16.mxu1 (%p983_p10), %v2044_v50 }
 0x197   : > { %1670 = vmatmul.mubr.bf16.gmra.mxu1 %v1827_v55  ;;  %v1837_v55 = vld [vmem:[#allocation9 + $0x30] sm:$0xff] (%p983_p10)  }
 0x198   : > { %1709 = vmatprep.mubr.msk.bf16.mxu1 (%p983_p10), %vm2045_vm0, %v2044_v50  ;;  %1696 = vmatpush3.bf16.msra.mxu1 (%p983_p10), %v1837_v55 }
 0x199   : > { %1697 = vmatprep.subr.bf16.mxu1 (%p983_p10), %v2044_v50 }
 0x23f   : > { %v1659_v56 = vpop.f32.mrf.mxu1 }
 0x240   : > { %v829_v59 = vadd.f32 %v1659_v56, %v1367_v57 }
 0x241   : > { %v820_v58 = vpop.f32.mrf.mxu1 }
 0x242   : > { %v821_v61 = vadd.f32 %v1367_v57, %v820_v58  ;;  %v885_v0 = vmax.f32 %v829_v59, 0.0  ;;  %v1839_v59 = vld [vmem:[#allocation9 + $0x20] sm:$0xff] (%p983_p10)  }
 0x243   : > { %v1660_v60 = vpop.f32.mrf.mxu1 }
 0x244   : > { %v832_v62 = vadd.f32 %v1660_v60, %v1367_v57  ;;  %v883_v4 = vmax.f32 %v821_v61, 0.0  ;;  %v1840_v61 = vld [vmem:[#allocation9 + $0x18] sm:$0xff] (%p983_p10)  }
 0x245   : > { %v823_v63 = vpop.f32.mrf.mxu1 }
 0x246   : > { %v886_v1 = vmax.f32 %v832_v62, 0.0  ;;  %v824_v2 = vadd.f32 %v1367_v57, %v823_v63  ;;  %v1841_v63 = vld [vmem:[#allocation9 + $0x10] sm:$0xff] (%p983_p10)  }
 0x247   : > { %v1663_v3 = vpop.f32.mrf.mxu1 }
 0x248   : > { %v1513_v5 = vpack.c.bf16 %v886_v1, %v885_v0  ;;  %v884_v6 = vmax.f32 %v824_v2, 0.0  ;;  %v845_v9 = vadd.f32 %v1663_v3, %v1367_v57  ;;  %v988_v0 = vld [vmem:[%s2309_s4] sm:$0xf] (%p983_p10)  ;;  %v1842_v1 = vld [vmem:[#allocation9 + $0x8] sm:$0xff] (%p983_p10)  }
 0x249   : > { %v836_v7 = vpop.f32.mrf.mxu1  ;;  %v1843_v2 = vld [vmem:[#allocation9] sm:$0xff] (%p983_p10)  }
 0x24a   : > { %1552 = vst [vmem:[%s2244_s17 + $0x8] sm:$0xff] %v1513_v5   ;;  %v1508_v8 = vpack.c.bf16 %v884_v6, %v883_v4  ;;  %v837_v11 = vadd.f32 %v1367_v57, %v836_v7  ;;  %v889_v14 = vmax.f32 %v845_v9, 0.0 }
 0x24b   : > { %v1664_v10 = vpop.f32.mrf.mxu1 }
 0x24c   : > { %1509 = vst [vmem:[%s2244_s17] sm:$0xff] %v1508_v8   ;;  %v848_v12 = vadd.f32 %v1664_v10, %v1367_v57  ;;  %v887_v18 = vmax.f32 %v837_v11, 0.0  ;;  %v1412_v8 = vld [vmem:[%s2311_s6] ss:$0 sm:$0xff] (%p983_p10) }
 0x24d   : > { %v839_v13 = vpop.f32.mrf.mxu1 }
 0x24e   : > { %v890_v15 = vmax.f32 %v848_v12, 0.0  ;;  %v840_v16 = vadd.f32 %v1367_v57, %v839_v13 }
 0x24f   : > { %v1667_v17 = vpop.f32.mrf.mxu1 }
 0x250   : > { %v1523_v19 = vpack.c.bf16 %v890_v15, %v889_v14  ;;  %v888_v20 = vmax.f32 %v840_v16, 0.0  ;;  %v861_v23 = vadd.f32 %v1667_v17, %v1367_v57 }
 0x251   : > { %v852_v21 = vpop.f32.mrf.mxu1  ;;  %v1834_v60 = vld [vmem:[%s2244_s17 + $0x8] sm:$0xff] (%p983_p10)  }
 0x252   : > { %1554 = vst [vmem:[%s2244_s17 + $0x18] sm:$0xff] %v1523_v19   ;;  %v1518_v22 = vpack.c.bf16 %v888_v20, %v887_v18  ;;  %v853_v25 = vadd.f32 %v1367_v57, %v852_v21  ;;  %v893_v28 = vmax.f32 %v861_v23, 0.0 }
 0x253   : > { %v1668_v24 = vpop.f32.mrf.mxu1  ;;  %v1835_v62 = vld [vmem:[%s2244_s17] sm:$0xff] (%p983_p10)  }
 0x254   : > { %1553 = vst [vmem:[%s2244_s17 + $0x10] sm:$0xff] %v1518_v22   ;;  %v864_v26 = vadd.f32 %v1668_v24, %v1367_v57  ;;  %v891_v32 = vmax.f32 %v853_v25, 0.0 }
 0x255   : > { %v855_v27 = vpop.f32.mrf.mxu1 }
 0x256   : > { %v894_v29 = vmax.f32 %v864_v26, 0.0  ;;  %v856_v30 = vadd.f32 %v1367_v57, %v855_v27 }
 0x257   : > { %v1671_v31 = vpop.f32.mrf.mxu1 }
 0x258   : > { %v1533_v33 = vpack.c.bf16 %v894_v29, %v893_v28  ;;  %v892_v34 = vmax.f32 %v856_v30, 0.0  ;;  %v877_v37 = vadd.f32 %v1671_v31, %v1367_v57 }
 0x259   : > { %v868_v35 = vpop.f32.mrf.mxu1  ;;  %v1832_v56 = vld [vmem:[%s2244_s17 + $0x18] sm:$0xff] (%p983_p10)  }
 0x25a   : > { %1556 = vst [vmem:[%s2244_s17 + $0x28] sm:$0xff] %v1533_v33   ;;  %v1528_v36 = vpack.c.bf16 %v892_v34, %v891_v32  ;;  %v869_v39 = vadd.f32 %v1367_v57, %v868_v35  ;;  %v897_v42 = vmax.f32 %v877_v37, 0.0 }
 0x25b   : > { %v1672_v38 = vpop.f32.mrf.mxu1  ;;  %v1833_v58 = vld [vmem:[%s2244_s17 + $0x10] sm:$0xff] (%p983_p10)  }
 0x25c   : > { %1555 = vst [vmem:[%s2244_s17 + $0x20] sm:$0xff] %v1528_v36   ;;  %v880_v40 = vadd.f32 %v1672_v38, %v1367_v57  ;;  %v895_v45 = vmax.f32 %v869_v39, 0.0 }
 0x25d   : > { %v871_v41 = vpop.f32.mrf.mxu1 }
 0x25e   : > { %v898_v43 = vmax.f32 %v880_v40, 0.0  ;;  %v872_v44 = vadd.f32 %v1367_v57, %v871_v41  ;;  %v1838_v57 = vld [vmem:[#allocation9 + $0x28] sm:$0xff] (%p983_p10)  }
 0x25f   : > { %1698 = vmatpush3.bf16.msra.mxu1 (%p983_p10), %v1838_v57 }
 0x260   : > { %v1543_v46 = vpack.c.bf16 %v898_v43, %v897_v42  ;;  %v896_v47 = vmax.f32 %v872_v44, 0.0  ;;  %987 = sbr.rel (!%p983_p10) target bundleno = 1043 (0x413), region = 68  ;;  %1699 = vmatprep.subr.bf16.mxu1 (%p983_p10), %v2044_v50 }
 0x261   : > { %v1830_v52 = vld [vmem:[%s2244_s17 + $0x28] sm:$0xff] (%p983_p10)  }
 0x262   : > { %1558 = vst [vmem:[%s2244_s17 + $0x38] sm:$0xff] %v1543_v46   ;;  %v1538_v48 = vpack.c.bf16 %v896_v47, %v895_v45 }
 0x263   : > { %v1831_v54 = vld [vmem:[%s2244_s17 + $0x20] sm:$0xff] (%p983_p10)   ;;  %1700 = vmatpush3.bf16.msra.mxu1 (%p983_p10), %v1839_v59 }
 0x264   : > { %1557 = vst [vmem:[%s2244_s17 + $0x30] sm:$0xff] %v1538_v48   ;;  %1701 = vmatprep.subr.bf16.mxu1 (%p983_p10), %v2044_v50 }
 0x267   : > { %1702 = vmatpush3.bf16.msra.mxu1 %v1840_v61 }
 0x268   : > { %1703 = vmatprep.subr.bf16.mxu1 %v2044_v50 }
 0x269   : > { %v1828_v49 = vld [vmem:[%s2244_s17 + $0x38] sm:$0xff]  }
 0x26a   : > { %1674 = vmatpush3.bf16.msra.mxu0 %v1828_v49 }
 0x26b   : > { %v1829_v51 = vld [vmem:[%s2244_s17 + $0x30] sm:$0xff]   ;;  %1675 = vmatprep.subr.bf16.mxu0 %v2044_v50  ;;  %1704 = vmatpush3.bf16.msra.mxu1 %v1841_v63 }
 0x26c   : > { %1705 = vmatprep.subr.bf16.mxu1 %v2044_v50 }
 0x26e   : > { %1676 = vmatpush3.bf16.msra.mxu0 %v1829_v51 }
 0x26f   : > { %1677 = vmatprep.subr.bf16.mxu0 %v2044_v50  ;;  %1706 = vmatpush3.bf16.msra.mxu1 %v1842_v1 }
 0x270   : > { %1707 = vmatprep.subr.bf16.mxu1 %v2044_v50 }
 0x272   : > { %1678 = vmatpush3.bf16.msra.mxu0 %v1830_v52 }
 0x273   : > { %1679 = vmatprep.subr.bf16.mxu0 %v2044_v50  ;;  %1708 = vmatpush3.bf16.msra.mxu1 %v1843_v2 }
 0x276   : > { %1680 = vmatpush3.bf16.msra.mxu0 %v1831_v54 }
 0x277   : > { %1681 = vmatprep.subr.bf16.mxu0 %v2044_v50 }
 0x27a   : > { %1682 = vmatpush3.bf16.msra.mxu0 %v1832_v56 }
 0x27b   : > { %1683 = vmatprep.subr.bf16.mxu0 %v2044_v50 }
 0x27e   : > { %1684 = vmatpush3.bf16.msra.mxu0 %v1833_v58 }
 0x27f   : > { %1685 = vmatprep.subr.bf16.mxu0 %v2044_v50 }
 0x282   : > { %1686 = vmatpush3.bf16.msra.mxu0 %v1834_v60 }
 0x283   : > { %1687 = vmatprep.subr.bf16.mxu0 %v2044_v50 }
 0x286   : > { %1688 = vmatpush3.bf16.msra.mxu0 %v1835_v62 }
 0x289   : > { %1690 = vmatmul.mubr.bf16.vlgmr.msra.gmra.mxu0 %v988_v0 }
 0x349   : > { %v1089_v3 = vpop.f32.mrf.mxu0 }
 0x34a   : > { %v1095_v4 = vpack.c.bf16 %v1089_v3, %v1089_v3 }
 0x34b   : > { %v1691_v5 = vpop.f32.mrf.mxu0 }
 0x34c   : > { %1710 = vmatmul.mubr.bf16.vlgmr.msra.gmra.mxu1 %v1095_v4 }
 0x34d   : > { %v1092_v6 = vpop.f32.mrf.mxu0 }
 0x34f   : > { %v1692_v7 = vpop.f32.mrf.mxu0 }
 0x40c   : > { %v1201_v9 = vpop.f32.mrf.mxu1 }
 0x40d   : > { %v1202_v10 = vadd.f32 %v1412_v8, %v1201_v9 }
 0x40e   : > { %v1711_v11 = vpop.f32.mrf.mxu1 }
 0x40f   : > { %1207 = vst [vmem:[#allocation11] sm:$0xff] %v1202_v10 }
 0x410   : > { %v1204_v12 = vpop.f32.mrf.mxu1 }
 0x412   : > { %v1712_v13 = vpop.f32.mrf.mxu1 }
 0x413 PF: > { %s2323_s12 = sadd.s32 4294967295, %s2036_s29   ;;  %s2046_s8 = smov [#allocation11]  }
 0x414   : > { %p2272_p13 = scmp.eq.s32.totalorder %s2323_s12, 2  ;;  %s1215_s20 = sshll.u32 %s2046_s8, 4  ;;  %s1216_s20 = int_to_ptr.vmem [resolvable:$true] %s1215_s20 }
 0x415   : > { %s1946_s13 = scalar_lea.vmem %s1216_s20, 128  ;;  %p1953_p6 = scmp.lt.s32.totalorder %s1216_s20, %s1216_s20 }
 0x416   : > { %p1947_p0 = scmp.ne.s32.totalorder %s1216_s20, %s1946_s13  ;;  %p1954_p8 = scmp.lt.s32.totalorder %s1946_s13, %s1946_s13 }
 0x418   : > { %p1948_p2 = pnand %p1947_p0, %p2272_p13  ;;  %p1955_p9 = por %p1954_p8, %p1953_p6 }
 0x41a   : > { %p1949_p3 = pneg %p1948_p2 }
 0x41c   : > { %p1956_p5 = pnand %p1955_p9, %p1949_p3 }
 0x41e   : > { %1959 = shalt.err (!%p1956_p5)
}
 0x41f   : > { %1724 = dma.vmem_to_hbm [thread:$0]  (%p2272_p13), %s1216_s20, 128, %s2312_s7, [#allocation8]  }
 0x420   : > { %2011 = dma.done.wait (%p2272_p13), [#allocation8], 128  }
 0x421   : > { %2013 = vsyncadd (%p2272_p13), [#allocation8], 4294967168 }
 0x422 PF: > { %s22_s29 = sadd.s32 1, %s2036_s29   ;;  %s2325_s24 = smov %s2020_s25 }
 0x423   : > { %p19_p1 = scmp.ge.s32.totalorder %s22_s29, 5   ;;  %s2326_s25 = smov %s2024_s26 }
 0x424   : > { %s2327_s26 = smov %s2166_s11  ;;  %s2328_s27 = smov %s2032_s28 }
 0x425   : > { %s2329_s28 = smov %s2331_s14  ;;  %21 = sbr.rel (!%p19_p1) target bundleno = 6 (0x6), region = 110 }
 0x42a   :  { %1228 = vsyncpa [#allocation7], 1 }
 0x42b   :  { %1230 = vsyncpa [#allocation7 + $0x1], 1 }
 0x42c   :  { %1231 = vsyncpa [#allocation10], 1 }
 0x42d   :  { %1232 = vsyncpa [#allocation8], 1 }
 0x42e   :  { %1234 = vsyncpa [#allocation8 + $0x1], 1 }
 0x42f   :  { %1235 = vsyncmov [#allocation5] }
 0x432   :  { %s1236_s22 = vpop.sfrf %1235 }
 0x433   :  { %p1425_p4 = scmp.ne.s32.totalorder %s1236_s22, 0 }
 0x435   :  { %1240 = shalt.err (%p1425_p4)  }
 0x436   :  { %1242 = vsyncmov [#allocation5 + $0x1] }
 0x439   :  { %s1243_s15 = vpop.sfrf %1242 }
 0x43a   :  { %p1426_p11 = scmp.ne.s32.totalorder %s1243_s15, 0 }
 0x43c   :  { %1247 = shalt.err (%p1426_p11)  }

</bundles_post_ra>
